<compile_context>
chip_gen: v6e
topology: v6e:2x2x1
jax: 0.10.0
libtpu: 0.0.40
codegen_flags: <defaults>
</compile_context>

<pallas_src>
import jax
import jax.numpy as jnp
from jax.experimental import pallas as pl
from jax.experimental.pallas import tpu as pltpu

BN_EPS = 1e-5
OFF = 8  # sublane-aligned offset of the valid rows inside the padded VMEM scratch


# ----------------------------- fused conv-stack + GRU + FC kernel -----------------------------
def make_fused_kernel(n_conv, K, c_ins, S, H, O):
    """Whole-network kernel for one batch element (the grid iterates / shards over batch)."""
    pad = K // 2

    def kernel(*refs):
        i = 0
        x_ref = refs[i]; i += 1                                    # (1, S, C0)
        conv_refs = refs[i:i + 2 * n_conv]; i += 2 * n_conv        # per layer: (K*C_l, H), (1, H)
        wih_ref, whh_ref, bih_ref, bhh_ref, wfc_ref, bfc_ref = refs[i:i + 6]; i += 6
        o_ref = refs[i]; i += 1                                    # (1, 1, O)
        xpad_ref = refs[i]                                         # (OFF + S + pad, Cmax) scratch

        # ---- CNN stack: im2col conv + folded BN/bias + ReLU; halo kept in VMEM scratch ----
        xpad_ref[...] = jnp.zeros_like(xpad_ref)                   # zero halo rows once
        xpad_ref[OFF:OFF + S, :c_ins[0]] = x_ref[0]                # sublane-aligned interior store
        y = None
        for l in range(n_conv):
            w = conv_refs[2 * l][...]                              # (K*C_l, H) — BN & featw folded in
            b = conv_refs[2 * l + 1][...]                          # (1, H)    — conv bias + BN folded
            C = c_ins[l]
            xp = xpad_ref[...]
            cols = jnp.concatenate(                                # im2col -> one MXU push per layer
                [xp[OFF - pad + k: OFF - pad + k + S, :C] for k in range(K)], axis=1)
            y = jnp.dot(cols, w, preferred_element_type=jnp.float32) + b
            y = jnp.maximum(y, 0.0)                                # (S, H); Dropout = identity (eval)
            if l + 1 < n_conv:
                xpad_ref[OFF:OFF + S, :H] = y                      # interior for the next layer

        # ---- GRU: hoisted, gate-concatenated input projection for all timesteps ----
        gi_all = jnp.dot(y, wih_ref[...], preferred_element_type=jnp.float32) + bih_ref[...]  # (S, 3H)
        whh = whh_ref[...]                                         # (H, 3H), gate order (r|z|n)
        bhh = bhh_ref[...]                                         # (1, 3H)
        h = jnp.zeros((1, H), jnp.float32)
        for t in range(S):                                         # fully unrolled recurrence
            gi = gi_all[t:t + 1, :]                                # (1, 3H)
            gh = jnp.dot(h, whh, preferred_element_type=jnp.float32) + bhh
            rz = jax.nn.sigmoid(gi[:, :2 * H] + gh[:, :2 * H])
            r = rz[:, :H]
            z = rz[:, H:2 * H]
            n = jnp.tanh(gi[:, 2 * H:] + r * gh[:, 2 * H:])
            h = (1.0 - z) * n + z * h

        # ---- final Linear on the last hidden state ----
        out = jnp.dot(h, wfc_ref[...], preferred_element_type=jnp.float32) + bfc_ref[...]
        o_ref[0] = out.astype(o_ref.dtype)

    return kernel


def cnnrnn_forward(x, fp):
    """x: (B, S, input_dim) -> (B, output_dim), using kernel-ready params from fold_params()."""
    B, S, C0 = x.shape
    H = fp["wih"].shape[0]
    O = fp["wfc"].shape[1]
    c_ins = fp["c_ins"]
    K = fp["kernel_size"]
    n_conv = len(fp["conv_w"])
    pad = K // 2
    Cmax = max(max(c_ins), H)

    kernel = make_fused_kernel(n_conv, K, c_ins, S, H, O)

    conv_args, conv_specs = [], []
    for l in range(n_conv):
        w, b = fp["conv_w"][l], fp["conv_b"][l]
        conv_args += [w, b]
        conv_specs += [pl.BlockSpec(w.shape, lambda bb: (0, 0)),
                       pl.BlockSpec(b.shape, lambda bb: (0, 0))]

    def full2d(arr):
        return pl.BlockSpec(arr.shape, lambda bb: (0, 0))

    out = pl.pallas_call(
        kernel,
        out_shape=jax.ShapeDtypeStruct((B, 1, O), jnp.float32),
        grid=(B,),
        in_specs=[pl.BlockSpec((1, S, C0), lambda bb: (bb, 0, 0))] + conv_specs + [
            full2d(fp["wih"]), full2d(fp["whh"]), full2d(fp["bih"]),
            full2d(fp["bhh"]), full2d(fp["wfc"]), full2d(fp["bfc"]),
        ],
        out_specs=pl.BlockSpec((1, 1, O), lambda bb: (bb, 0, 0)),
        scratch_shapes=[pltpu.VMEM((OFF + S + pad, Cmax), jnp.float32)],
        compiler_params=pltpu.CompilerParams(dimension_semantics=("parallel",)),
    )(x, *conv_args, fp["wih"], fp["whh"], fp["bih"], fp["bhh"], fp["wfc"], fp["bfc"])
    return out.reshape(B, O)


# ----------------------------- one-time weight prep (pure algebra) -----------------------------
def fold_params(params):
    """Fold feature_weights + conv bias + eval-mode BatchNorm into im2col conv weights/biases,
    and concatenate the GRU gate weights in PyTorch order (r|z|n)."""
    fw = params["feature_weights"]
    conv_w, conv_b, c_ins = [], [], []
    K = params["conv_w"][0].shape[0]
    for l in range(len(params["conv_w"])):
        w = params["conv_w"][l]                                    # (K, C_in, H)
        _, C_in, H = w.shape
        scale = params["bn_gamma"][l] / jnp.sqrt(params["bn_var"][l] + BN_EPS)          # (H,)
        bias = params["bn_beta"][l] + (params["conv_b"][l] - params["bn_mean"][l]) * scale
        w_eff = w * scale[None, None, :]
        if l == 0:
            w_eff = w_eff * fw[None, :, None]                      # fold x * feature_weights
        conv_w.append(w_eff.reshape(K * C_in, H))                  # im2col rows ordered (tap, channel)
        conv_b.append(bias[None, :])
        c_ins.append(C_in)

    def cat(a):                                                    # (3, X, H) -> (X, 3H), order (r|z|n)
        return jnp.concatenate([a[0], a[1], a[2]], axis=-1)

    return {
        "conv_w": conv_w, "conv_b": conv_b, "c_ins": tuple(c_ins), "kernel_size": K,
        "wih": cat(params["gru_wih"]), "whh": cat(params["gru_whh"]),
        "bih": cat(params["gru_bih"]), "bhh": cat(params["gru_bhh"]),
        "wfc": params["fc_w"], "bfc": params["fc_b"],
    }


# ----------------------------- parameter init -----------------------------
def init_params(key, input_dim, hidden_dim, output_dim, cnn_layers=2, kernel_size=3):
    # padding=K//2 only matches PyTorch Conv1d output length for odd K
    assert kernel_size % 2 == 1
    keys = iter(jax.random.split(key, 6 * cnn_layers + 8))

    def nrm(shape, s=0.1):
        return s * jax.random.normal(next(keys), shape, jnp.float32)

    # torch init is ones; perturbed here to exercise the feature-weight fold
    p = {"feature_weights": 1.0 + nrm((input_dim,))}
    p["conv_w"], p["conv_b"] = [], []
    p["bn_gamma"], p["bn_beta"], p["bn_mean"], p["bn_var"] = [], [], [], []
    c_in = input_dim
    for _ in range(cnn_layers):
        p["conv_w"].append(nrm((kernel_size, c_in, hidden_dim)))
        p["conv_b"].append(nrm((hidden_dim,)))
        p["bn_gamma"].append(1.0 + nrm((hidden_dim,)))
        p["bn_beta"].append(nrm((hidden_dim,)))
        p["bn_mean"].append(nrm((hidden_dim,)))
        p["bn_var"].append(1.0 + jnp.abs(nrm((hidden_dim,), 0.5)))
        c_in = hidden_dim
    p["gru_wih"] = nrm((3, hidden_dim, hidden_dim))   # gate order (r, z, n), stored as x @ W.T form
    p["gru_whh"] = nrm((3, hidden_dim, hidden_dim))
    p["gru_bih"] = nrm((3, 1, hidden_dim))
    p["gru_bhh"] = nrm((3, 1, hidden_dim))
    p["fc_w"] = nrm((hidden_dim, output_dim))
    p["fc_b"] = nrm((1, output_dim))
    return p


# ----------------------------- pure-JAX reference (unfused, raw params) -----------------------------
def reference_forward(x, params):
    h = x * params["feature_weights"]
    for l in range(len(params["conv_w"])):
        w, cb = params["conv_w"][l], params["conv_b"][l]
        K = w.shape[0]
        pad = K // 2
        S = h.shape[1]
        xp = jnp.pad(h, ((0, 0), (pad, pad), (0, 0)))
        conv = sum(jnp.einsum("bsc,cd->bsd", xp[:, k:k + S, :], w[k]) for k in range(K)) + cb
        bn = (conv - params["bn_mean"][l]) / jnp.sqrt(params["bn_var"][l] + BN_EPS)
        bn = bn * params["bn_gamma"][l] + params["bn_beta"][l]
        h = jnp.maximum(bn, 0.0)
    B, S, H = h.shape
    hs = jnp.zeros((B, H), jnp.float32)
    wih, whh = params["gru_wih"], params["gru_whh"]
    bih, bhh = params["gru_bih"], params["gru_bhh"]
    for t in range(S):
        x_t = h[:, t, :]
        gi = [x_t @ wih[g] + bih[g] for g in range(3)]
        gh = [hs @ whh[g] + bhh[g] for g in range(3)]
        r = jax.nn.sigmoid(gi[0] + gh[0])
        z = jax.nn.sigmoid(gi[1] + gh[1])
        n = jnp.tanh(gi[2] + r * gh[2])
        hs = (1.0 - z) * n + z * hs
    return hs @ params["fc_w"] + params["fc_b"]


if __name__ == "__main__":
    B, S, INPUT_DIM, HIDDEN_DIM, OUTPUT_DIM = 2, 8, 4, 32, 2
    key = jax.random.PRNGKey(0)
    k_x, k_p = jax.random.split(key)
    x = jax.random.normal(k_x, (B, S, INPUT_DIM), jnp.float32)
    params = init_params(k_p, INPUT_DIM, HIDDEN_DIM, OUTPUT_DIM)
    folded = fold_params(params)

    out = jax.block_until_ready(cnnrnn_forward(x, folded))
    ref = jax.block_until_ready(reference_forward(x, params))

    assert out.shape == (B, OUTPUT_DIM), out.shape
    assert bool(jnp.all(jnp.isfinite(out)))
    assert jnp.allclose(out, ref, atol=1e-3, rtol=1e-3), (out, ref)
    print("KERNEL_OK")
</pallas_src>

<mosaic_0001>
module attributes {stable_mosaic.version = 11 : i64} {
  func.func @kernel(%arg0: i32, %arg1: memref<1x8x4xf32, #tpu.memory_space<vmem>>, %arg2: memref<12x32xf32, #tpu.memory_space<vmem>>, %arg3: memref<1x32xf32, #tpu.memory_space<vmem>>, %arg4: memref<96x32xf32, #tpu.memory_space<vmem>>, %arg5: memref<1x32xf32, #tpu.memory_space<vmem>>, %arg6: memref<32x96xf32, #tpu.memory_space<vmem>>, %arg7: memref<32x96xf32, #tpu.memory_space<vmem>>, %arg8: memref<1x96xf32, #tpu.memory_space<vmem>>, %arg9: memref<1x96xf32, #tpu.memory_space<vmem>>, %arg10: memref<32x2xf32, #tpu.memory_space<vmem>>, %arg11: memref<1x2xf32, #tpu.memory_space<vmem>>, %arg12: memref<1x1x2xf32, #tpu.memory_space<vmem>>, %arg13: memref<17x32xf32, #tpu.memory_space<vmem>>) attributes {dimension_semantics = [#tpu.dimension_semantics<parallel>], iteration_bounds = array<i64: 2>, scalar_prefetch = 0 : i64, scratch_operands = 1 : i64, tpu.core_type = #tpu.core_type<tc>, window_params = [{transform_indices = @transform_0, window_bounds = array<i64: 1, 8, 4>}, {pipeline_mode = #tpu.pipeline_mode<synchronous>, transform_indices = @transform_1, window_bounds = array<i64: 12, 32>}, {pipeline_mode = #tpu.pipeline_mode<synchronous>, transform_indices = @transform_2, window_bounds = array<i64: 1, 32>}, {pipeline_mode = #tpu.pipeline_mode<synchronous>, transform_indices = @transform_3, window_bounds = array<i64: 96, 32>}, {pipeline_mode = #tpu.pipeline_mode<synchronous>, transform_indices = @transform_4, window_bounds = array<i64: 1, 32>}, {pipeline_mode = #tpu.pipeline_mode<synchronous>, transform_indices = @transform_5, window_bounds = array<i64: 32, 96>}, {pipeline_mode = #tpu.pipeline_mode<synchronous>, transform_indices = @transform_6, window_bounds = array<i64: 32, 96>}, {pipeline_mode = #tpu.pipeline_mode<synchronous>, transform_indices = @transform_7, window_bounds = array<i64: 1, 96>}, {pipeline_mode = #tpu.pipeline_mode<synchronous>, transform_indices = @transform_8, window_bounds = array<i64: 1, 96>}, {pipeline_mode = #tpu.pipeline_mode<synchronous>, transform_indices = @transform_9, window_bounds = array<i64: 32, 2>}, {pipeline_mode = #tpu.pipeline_mode<synchronous>, transform_indices = @transform_10, window_bounds = array<i64: 1, 2>}, {transform_indices = @transform_11, window_bounds = array<i64: 1, 1, 2>}]} {
    %cst = arith.constant 0.000000e+00 : f32
    %0 = vector.broadcast %cst : f32 to vector<17x32xf32>
    %c0 = arith.constant 0 : index
    %c0_0 = arith.constant 0 : index
    %1 = vector.load %arg13[%c0, %c0_0] : memref<17x32xf32, #tpu.memory_space<vmem>>, vector<17x32xf32>
    tpu.vector_store %arg13[%c0, %c0_0], %0 {strides = array<i32>} : memref<17x32xf32, #tpu.memory_space<vmem>>, vector<17x32xf32>,
    %c0_1 = arith.constant 0 : index
    %c0_2 = arith.constant 0 : index
    %c0_3 = arith.constant 0 : index
    %2 = vector.load %arg1[%c0_1, %c0_2, %c0_3] : memref<1x8x4xf32, #tpu.memory_space<vmem>>, vector<1x8x4xf32>
    %3 = vector.shape_cast %2 : vector<1x8x4xf32> to vector<8x4xf32>
    %c8 = arith.constant 8 : index
    %c0_4 = arith.constant 0 : index
    %4 = vector.load %arg13[%c8, %c0_4] : memref<17x32xf32, #tpu.memory_space<vmem>>, vector<8x4xf32>
    tpu.vector_store %arg13[%c8, %c0_4], %3 {strides = array<i32>} : memref<17x32xf32, #tpu.memory_space<vmem>>, vector<8x4xf32>,
    %c0_5 = arith.constant 0 : index
    %c0_6 = arith.constant 0 : index
    %5 = vector.load %arg2[%c0_5, %c0_6] : memref<12x32xf32, #tpu.memory_space<vmem>>, vector<12x32xf32>
    %c0_7 = arith.constant 0 : index
    %c0_8 = arith.constant 0 : index
    %6 = vector.load %arg3[%c0_7, %c0_8] : memref<1x32xf32, #tpu.memory_space<vmem>>, vector<1x32xf32>
    %c0_9 = arith.constant 0 : index
    %c0_10 = arith.constant 0 : index
    %7 = vector.load %arg13[%c0_9, %c0_10] : memref<17x32xf32, #tpu.memory_space<vmem>>, vector<17x32xf32>
    %8 = vector.extract_strided_slice %7 {offsets = [7, 0], sizes = [8, 4], strides = [1, 1]} : vector<17x32xf32> to vector<8x4xf32>
    %9 = vector.extract_strided_slice %7 {offsets = [8, 0], sizes = [8, 4], strides = [1, 1]} : vector<17x32xf32> to vector<8x4xf32>
    %10 = vector.extract_strided_slice %7 {offsets = [9, 0], sizes = [8, 4], strides = [1, 1]} : vector<17x32xf32> to vector<8x4xf32>
    %11 = tpu.concatenate %8, %9, %10 in 1 : vector<8x4xf32>, vector<8x4xf32>, vector<8x4xf32> -> vector<8x12xf32>
    %cst_11 = arith.constant dense<0.000000e+00> : vector<8x32xf32>
    %12 = tpu.matmul %11, %5, %cst_11 {dimension_numbers = #tpu.dot_dimension_numbers<[1], [0], [0], [1], [0, 0, 1, 1], [], []>} : vector<8x12xf32>, vector<12x32xf32>, vector<8x32xf32> -> vector<8x32xf32>
    %13 = vector.broadcast %6 : vector<1x32xf32> to vector<8x32xf32>
    %14 = arith.addf %12, %13 : vector<8x32xf32>
    %cst_12 = arith.constant 0.000000e+00 : f32
    %15 = vector.broadcast %cst_12 : f32 to vector<8x32xf32>
    %16 = arith.maximumf %14, %15 : vector<8x32xf32>
    %c8_13 = arith.constant 8 : index
    %c0_14 = arith.constant 0 : index
    %17 = vector.load %arg13[%c8_13, %c0_14] : memref<17x32xf32, #tpu.memory_space<vmem>>, vector<8x32xf32>
    tpu.vector_store %arg13[%c8_13, %c0_14], %16 {strides = array<i32>} : memref<17x32xf32, #tpu.memory_space<vmem>>, vector<8x32xf32>,
    %c0_15 = arith.constant 0 : index
    %c0_16 = arith.constant 0 : index
    %18 = vector.load %arg4[%c0_15, %c0_16] : memref<96x32xf32, #tpu.memory_space<vmem>>, vector<96x32xf32>
    %c0_17 = arith.constant 0 : index
    %c0_18 = arith.constant 0 : index
    %19 = vector.load %arg5[%c0_17, %c0_18] : memref<1x32xf32, #tpu.memory_space<vmem>>, vector<1x32xf32>
    %c0_19 = arith.constant 0 : index
    %c0_20 = arith.constant 0 : index
    %20 = vector.load %arg13[%c0_19, %c0_20] : memref<17x32xf32, #tpu.memory_space<vmem>>, vector<17x32xf32>
    %21 = vector.extract_strided_slice %20 {offsets = [7, 0], sizes = [8, 32], strides = [1, 1]} : vector<17x32xf32> to vector<8x32xf32>
    %22 = vector.extract_strided_slice %20 {offsets = [8, 0], sizes = [8, 32], strides = [1, 1]} : vector<17x32xf32> to vector<8x32xf32>
    %23 = vector.extract_strided_slice %20 {offsets = [9, 0], sizes = [8, 32], strides = [1, 1]} : vector<17x32xf32> to vector<8x32xf32>
    %24 = tpu.concatenate %21, %22, %23 in 1 : vector<8x32xf32>, vector<8x32xf32>, vector<8x32xf32> -> vector<8x96xf32>
    %cst_21 = arith.constant dense<0.000000e+00> : vector<8x32xf32>
    %25 = tpu.matmul %24, %18, %cst_21 {dimension_numbers = #tpu.dot_dimension_numbers<[1], [0], [0], [1], [0, 0, 1, 1], [], []>} : vector<8x96xf32>, vector<96x32xf32>, vector<8x32xf32> -> vector<8x32xf32>
    %26 = vector.broadcast %19 : vector<1x32xf32> to vector<8x32xf32>
    %27 = arith.addf %25, %26 : vector<8x32xf32>
    %cst_22 = arith.constant 0.000000e+00 : f32
    %28 = vector.broadcast %cst_22 : f32 to vector<8x32xf32>
    %29 = arith.maximumf %27, %28 : vector<8x32xf32>
    %c0_23 = arith.constant 0 : index
    %c0_24 = arith.constant 0 : index
    %30 = vector.load %arg6[%c0_23, %c0_24] : memref<32x96xf32, #tpu.memory_space<vmem>>, vector<32x96xf32>
    %cst_25 = arith.constant dense<0.000000e+00> : vector<8x96xf32>
    %31 = tpu.matmul %29, %30, %cst_25 {dimension_numbers = #tpu.dot_dimension_numbers<[1], [0], [0], [1], [0, 0, 1, 1], [], []>} : vector<8x32xf32>, vector<32x96xf32>, vector<8x96xf32> -> vector<8x96xf32>
    %c0_26 = arith.constant 0 : index
    %c0_27 = arith.constant 0 : index
    %32 = vector.load %arg8[%c0_26, %c0_27] : memref<1x96xf32, #tpu.memory_space<vmem>>, vector<1x96xf32>
    %33 = vector.broadcast %32 : vector<1x96xf32> to vector<8x96xf32>
    %34 = arith.addf %31, %33 : vector<8x96xf32>
    %c0_28 = arith.constant 0 : index
    %c0_29 = arith.constant 0 : index
    %35 = vector.load %arg7[%c0_28, %c0_29] : memref<32x96xf32, #tpu.memory_space<vmem>>, vector<32x96xf32>
    %c0_30 = arith.constant 0 : index
    %c0_31 = arith.constant 0 : index
    %36 = vector.load %arg9[%c0_30, %c0_31] : memref<1x96xf32, #tpu.memory_space<vmem>>, vector<1x96xf32>
    %cst_32 = arith.constant 0.000000e+00 : f32
    %37 = vector.broadcast %cst_32 : f32 to vector<1x32xf32>
    %38 = vector.extract_strided_slice %34 {offsets = [0, 0], sizes = [1, 96], strides = [1, 1]} : vector<8x96xf32> to vector<1x96xf32>
    %cst_33 = arith.constant dense<0.000000e+00> : vector<1x96xf32>
    %39 = tpu.matmul %37, %35, %cst_33 {dimension_numbers = #tpu.dot_dimension_numbers<[1], [0], [0], [1], [0, 0, 1, 1], [], []>} : vector<1x32xf32>, vector<32x96xf32>, vector<1x96xf32> -> vector<1x96xf32>
    %40 = arith.addf %39, %36 : vector<1x96xf32>
    %41 = vector.extract_strided_slice %38 {offsets = [0, 0], sizes = [1, 64], strides = [1, 1]} : vector<1x96xf32> to vector<1x64xf32>
    %42 = vector.extract_strided_slice %40 {offsets = [0, 0], sizes = [1, 64], strides = [1, 1]} : vector<1x96xf32> to vector<1x64xf32>
    %43 = arith.addf %41, %42 : vector<1x64xf32>
    %44 = arith.negf %43 : vector<1x64xf32>
    %45 = math.exp %44 : vector<1x64xf32>
    %cst_34 = arith.constant 1.000000e+00 : f32
    %46 = vector.broadcast %cst_34 : f32 to vector<1x64xf32>
    %47 = arith.addf %46, %45 : vector<1x64xf32>
    %48 = arith.divf %46, %47 : vector<1x64xf32>
    %49 = vector.extract_strided_slice %48 {offsets = [0, 0], sizes = [1, 32], strides = [1, 1]} : vector<1x64xf32> to vector<1x32xf32>
    %50 = vector.extract_strided_slice %48 {offsets = [0, 32], sizes = [1, 32], strides = [1, 1]} : vector<1x64xf32> to vector<1x32xf32>
    %51 = vector.extract_strided_slice %38 {offsets = [0, 64], sizes = [1, 32], strides = [1, 1]} : vector<1x96xf32> to vector<1x32xf32>
    %52 = vector.extract_strided_slice %40 {offsets = [0, 64], sizes = [1, 32], strides = [1, 1]} : vector<1x96xf32> to vector<1x32xf32>
    %53 = arith.mulf %49, %52 : vector<1x32xf32>
    %54 = arith.addf %51, %53 : vector<1x32xf32>
    %55 = math.tanh %54 : vector<1x32xf32>
    %cst_35 = arith.constant 1.000000e+00 : f32
    %56 = vector.broadcast %cst_35 : f32 to vector<1x32xf32>
    %57 = arith.subf %56, %50 : vector<1x32xf32>
    %58 = arith.mulf %57, %55 : vector<1x32xf32>
    %59 = arith.mulf %50, %37 : vector<1x32xf32>
    %60 = arith.addf %58, %59 : vector<1x32xf32>
    %61 = vector.extract_strided_slice %34 {offsets = [1, 0], sizes = [1, 96], strides = [1, 1]} : vector<8x96xf32> to vector<1x96xf32>
    %cst_36 = arith.constant dense<0.000000e+00> : vector<1x96xf32>
    %62 = tpu.matmul %60, %35, %cst_36 {dimension_numbers = #tpu.dot_dimension_numbers<[1], [0], [0], [1], [0, 0, 1, 1], [], []>} : vector<1x32xf32>, vector<32x96xf32>, vector<1x96xf32> -> vector<1x96xf32>
    %63 = arith.addf %62, %36 : vector<1x96xf32>
    %64 = vector.extract_strided_slice %61 {offsets = [0, 0], sizes = [1, 64], strides = [1, 1]} : vector<1x96xf32> to vector<1x64xf32>
    %65 = vector.extract_strided_slice %63 {offsets = [0, 0], sizes = [1, 64], strides = [1, 1]} : vector<1x96xf32> to vector<1x64xf32>
    %66 = arith.addf %64, %65 : vector<1x64xf32>
    %67 = arith.negf %66 : vector<1x64xf32>
    %68 = math.exp %67 : vector<1x64xf32>
    %cst_37 = arith.constant 1.000000e+00 : f32
    %69 = vector.broadcast %cst_37 : f32 to vector<1x64xf32>
    %70 = arith.addf %69, %68 : vector<1x64xf32>
    %71 = arith.divf %69, %70 : vector<1x64xf32>
    %72 = vector.extract_strided_slice %71 {offsets = [0, 0], sizes = [1, 32], strides = [1, 1]} : vector<1x64xf32> to vector<1x32xf32>
    %73 = vector.extract_strided_slice %71 {offsets = [0, 32], sizes = [1, 32], strides = [1, 1]} : vector<1x64xf32> to vector<1x32xf32>
    %74 = vector.extract_strided_slice %61 {offsets = [0, 64], sizes = [1, 32], strides = [1, 1]} : vector<1x96xf32> to vector<1x32xf32>
    %75 = vector.extract_strided_slice %63 {offsets = [0, 64], sizes = [1, 32], strides = [1, 1]} : vector<1x96xf32> to vector<1x32xf32>
    %76 = arith.mulf %72, %75 : vector<1x32xf32>
    %77 = arith.addf %74, %76 : vector<1x32xf32>
    %78 = math.tanh %77 : vector<1x32xf32>
    %cst_38 = arith.constant 1.000000e+00 : f32
    %79 = vector.broadcast %cst_38 : f32 to vector<1x32xf32>
    %80 = arith.subf %79, %73 : vector<1x32xf32>
    %81 = arith.mulf %80, %78 : vector<1x32xf32>
    %82 = arith.mulf %73, %60 : vector<1x32xf32>
    %83 = arith.addf %81, %82 : vector<1x32xf32>
    %84 = vector.extract_strided_slice %34 {offsets = [2, 0], sizes = [1, 96], strides = [1, 1]} : vector<8x96xf32> to vector<1x96xf32>
    %cst_39 = arith.constant dense<0.000000e+00> : vector<1x96xf32>
    %85 = tpu.matmul %83, %35, %cst_39 {dimension_numbers = #tpu.dot_dimension_numbers<[1], [0], [0], [1], [0, 0, 1, 1], [], []>} : vector<1x32xf32>, vector<32x96xf32>, vector<1x96xf32> -> vector<1x96xf32>
    %86 = arith.addf %85, %36 : vector<1x96xf32>
    %87 = vector.extract_strided_slice %84 {offsets = [0, 0], sizes = [1, 64], strides = [1, 1]} : vector<1x96xf32> to vector<1x64xf32>
    %88 = vector.extract_strided_slice %86 {offsets = [0, 0], sizes = [1, 64], strides = [1, 1]} : vector<1x96xf32> to vector<1x64xf32>
    %89 = arith.addf %87, %88 : vector<1x64xf32>
    %90 = arith.negf %89 : vector<1x64xf32>
    %91 = math.exp %90 : vector<1x64xf32>
    %cst_40 = arith.constant 1.000000e+00 : f32
    %92 = vector.broadcast %cst_40 : f32 to vector<1x64xf32>
    %93 = arith.addf %92, %91 : vector<1x64xf32>
    %94 = arith.divf %92, %93 : vector<1x64xf32>
    %95 = vector.extract_strided_slice %94 {offsets = [0, 0], sizes = [1, 32], strides = [1, 1]} : vector<1x64xf32> to vector<1x32xf32>
    %96 = vector.extract_strided_slice %94 {offsets = [0, 32], sizes = [1, 32], strides = [1, 1]} : vector<1x64xf32> to vector<1x32xf32>
    %97 = vector.extract_strided_slice %84 {offsets = [0, 64], sizes = [1, 32], strides = [1, 1]} : vector<1x96xf32> to vector<1x32xf32>
    %98 = vector.extract_strided_slice %86 {offsets = [0, 64], sizes = [1, 32], strides = [1, 1]} : vector<1x96xf32> to vector<1x32xf32>
    %99 = arith.mulf %95, %98 : vector<1x32xf32>
    %100 = arith.addf %97, %99 : vector<1x32xf32>
    %101 = math.tanh %100 : vector<1x32xf32>
    %cst_41 = arith.constant 1.000000e+00 : f32
    %102 = vector.broadcast %cst_41 : f32 to vector<1x32xf32>
    %103 = arith.subf %102, %96 : vector<1x32xf32>
    %104 = arith.mulf %103, %101 : vector<1x32xf32>
    %105 = arith.mulf %96, %83 : vector<1x32xf32>
    %106 = arith.addf %104, %105 : vector<1x32xf32>
    %107 = vector.extract_strided_slice %34 {offsets = [3, 0], sizes = [1, 96], strides = [1, 1]} : vector<8x96xf32> to vector<1x96xf32>
    %cst_42 = arith.constant dense<0.000000e+00> : vector<1x96xf32>
    %108 = tpu.matmul %106, %35, %cst_42 {dimension_numbers = #tpu.dot_dimension_numbers<[1], [0], [0], [1], [0, 0, 1, 1], [], []>} : vector<1x32xf32>, vector<32x96xf32>, vector<1x96xf32> -> vector<1x96xf32>
    %109 = arith.addf %108, %36 : vector<1x96xf32>
    %110 = vector.extract_strided_slice %107 {offsets = [0, 0], sizes = [1, 64], strides = [1, 1]} : vector<1x96xf32> to vector<1x64xf32>
    %111 = vector.extract_strided_slice %109 {offsets = [0, 0], sizes = [1, 64], strides = [1, 1]} : vector<1x96xf32> to vector<1x64xf32>
    %112 = arith.addf %110, %111 : vector<1x64xf32>
    %113 = arith.negf %112 : vector<1x64xf32>
    %114 = math.exp %113 : vector<1x64xf32>
    %cst_43 = arith.constant 1.000000e+00 : f32
    %115 = vector.broadcast %cst_43 : f32 to vector<1x64xf32>
    %116 = arith.addf %115, %114 : vector<1x64xf32>
    %117 = arith.divf %115, %116 : vector<1x64xf32>
    %118 = vector.extract_strided_slice %117 {offsets = [0, 0], sizes = [1, 32], strides = [1, 1]} : vector<1x64xf32> to vector<1x32xf32>
    %119 = vector.extract_strided_slice %117 {offsets = [0, 32], sizes = [1, 32], strides = [1, 1]} : vector<1x64xf32> to vector<1x32xf32>
    %120 = vector.extract_strided_slice %107 {offsets = [0, 64], sizes = [1, 32], strides = [1, 1]} : vector<1x96xf32> to vector<1x32xf32>
    %121 = vector.extract_strided_slice %109 {offsets = [0, 64], sizes = [1, 32], strides = [1, 1]} : vector<1x96xf32> to vector<1x32xf32>
    %122 = arith.mulf %118, %121 : vector<1x32xf32>
    %123 = arith.addf %120, %122 : vector<1x32xf32>
    %124 = math.tanh %123 : vector<1x32xf32>
    %cst_44 = arith.constant 1.000000e+00 : f32
    %125 = vector.broadcast %cst_44 : f32 to vector<1x32xf32>
    %126 = arith.subf %125, %119 : vector<1x32xf32>
    %127 = arith.mulf %126, %124 : vector<1x32xf32>
    %128 = arith.mulf %119, %106 : vector<1x32xf32>
    %129 = arith.addf %127, %128 : vector<1x32xf32>
    %130 = vector.extract_strided_slice %34 {offsets = [4, 0], sizes = [1, 96], strides = [1, 1]} : vector<8x96xf32> to vector<1x96xf32>
    %cst_45 = arith.constant dense<0.000000e+00> : vector<1x96xf32>
    %131 = tpu.matmul %129, %35, %cst_45 {dimension_numbers = #tpu.dot_dimension_numbers<[1], [0], [0], [1], [0, 0, 1, 1], [], []>} : vector<1x32xf32>, vector<32x96xf32>, vector<1x96xf32> -> vector<1x96xf32>
    %132 = arith.addf %131, %36 : vector<1x96xf32>
    %133 = vector.extract_strided_slice %130 {offsets = [0, 0], sizes = [1, 64], strides = [1, 1]} : vector<1x96xf32> to vector<1x64xf32>
    %134 = vector.extract_strided_slice %132 {offsets = [0, 0], sizes = [1, 64], strides = [1, 1]} : vector<1x96xf32> to vector<1x64xf32>
    %135 = arith.addf %133, %134 : vector<1x64xf32>
    %136 = arith.negf %135 : vector<1x64xf32>
    %137 = math.exp %136 : vector<1x64xf32>
    %cst_46 = arith.constant 1.000000e+00 : f32
    %138 = vector.broadcast %cst_46 : f32 to vector<1x64xf32>
    %139 = arith.addf %138, %137 : vector<1x64xf32>
    %140 = arith.divf %138, %139 : vector<1x64xf32>
    %141 = vector.extract_strided_slice %140 {offsets = [0, 0], sizes = [1, 32], strides = [1, 1]} : vector<1x64xf32> to vector<1x32xf32>
    %142 = vector.extract_strided_slice %140 {offsets = [0, 32], sizes = [1, 32], strides = [1, 1]} : vector<1x64xf32> to vector<1x32xf32>
    %143 = vector.extract_strided_slice %130 {offsets = [0, 64], sizes = [1, 32], strides = [1, 1]} : vector<1x96xf32> to vector<1x32xf32>
    %144 = vector.extract_strided_slice %132 {offsets = [0, 64], sizes = [1, 32], strides = [1, 1]} : vector<1x96xf32> to vector<1x32xf32>
    %145 = arith.mulf %141, %144 : vector<1x32xf32>
    %146 = arith.addf %143, %145 : vector<1x32xf32>
    %147 = math.tanh %146 : vector<1x32xf32>
    %cst_47 = arith.constant 1.000000e+00 : f32
    %148 = vector.broadcast %cst_47 : f32 to vector<1x32xf32>
    %149 = arith.subf %148, %142 : vector<1x32xf32>
    %150 = arith.mulf %149, %147 : vector<1x32xf32>
    %151 = arith.mulf %142, %129 : vector<1x32xf32>
    %152 = arith.addf %150, %151 : vector<1x32xf32>
    %153 = vector.extract_strided_slice %34 {offsets = [5, 0], sizes = [1, 96], strides = [1, 1]} : vector<8x96xf32> to vector<1x96xf32>
    %cst_48 = arith.constant dense<0.000000e+00> : vector<1x96xf32>
    %154 = tpu.matmul %152, %35, %cst_48 {dimension_numbers = #tpu.dot_dimension_numbers<[1], [0], [0], [1], [0, 0, 1, 1], [], []>} : vector<1x32xf32>, vector<32x96xf32>, vector<1x96xf32> -> vector<1x96xf32>
    %155 = arith.addf %154, %36 : vector<1x96xf32>
    %156 = vector.extract_strided_slice %153 {offsets = [0, 0], sizes = [1, 64], strides = [1, 1]} : vector<1x96xf32> to vector<1x64xf32>
    %157 = vector.extract_strided_slice %155 {offsets = [0, 0], sizes = [1, 64], strides = [1, 1]} : vector<1x96xf32> to vector<1x64xf32>
    %158 = arith.addf %156, %157 : vector<1x64xf32>
    %159 = arith.negf %158 : vector<1x64xf32>
    %160 = math.exp %159 : vector<1x64xf32>
    %cst_49 = arith.constant 1.000000e+00 : f32
    %161 = vector.broadcast %cst_49 : f32 to vector<1x64xf32>
    %162 = arith.addf %161, %160 : vector<1x64xf32>
    %163 = arith.divf %161, %162 : vector<1x64xf32>
    %164 = vector.extract_strided_slice %163 {offsets = [0, 0], sizes = [1, 32], strides = [1, 1]} : vector<1x64xf32> to vector<1x32xf32>
    %165 = vector.extract_strided_slice %163 {offsets = [0, 32], sizes = [1, 32], strides = [1, 1]} : vector<1x64xf32> to vector<1x32xf32>
    %166 = vector.extract_strided_slice %153 {offsets = [0, 64], sizes = [1, 32], strides = [1, 1]} : vector<1x96xf32> to vector<1x32xf32>
    %167 = vector.extract_strided_slice %155 {offsets = [0, 64], sizes = [1, 32], strides = [1, 1]} : vector<1x96xf32> to vector<1x32xf32>
    %168 = arith.mulf %164, %167 : vector<1x32xf32>
    %169 = arith.addf %166, %168 : vector<1x32xf32>
    %170 = math.tanh %169 : vector<1x32xf32>
    %cst_50 = arith.constant 1.000000e+00 : f32
    %171 = vector.broadcast %cst_50 : f32 to vector<1x32xf32>
    %172 = arith.subf %171, %165 : vector<1x32xf32>
    %173 = arith.mulf %172, %170 : vector<1x32xf32>
    %174 = arith.mulf %165, %152 : vector<1x32xf32>
    %175 = arith.addf %173, %174 : vector<1x32xf32>
    %176 = vector.extract_strided_slice %34 {offsets = [6, 0], sizes = [1, 96], strides = [1, 1]} : vector<8x96xf32> to vector<1x96xf32>
    %cst_51 = arith.constant dense<0.000000e+00> : vector<1x96xf32>
    %177 = tpu.matmul %175, %35, %cst_51 {dimension_numbers = #tpu.dot_dimension_numbers<[1], [0], [0], [1], [0, 0, 1, 1], [], []>} : vector<1x32xf32>, vector<32x96xf32>, vector<1x96xf32> -> vector<1x96xf32>
    %178 = arith.addf %177, %36 : vector<1x96xf32>
    %179 = vector.extract_strided_slice %176 {offsets = [0, 0], sizes = [1, 64], strides = [1, 1]} : vector<1x96xf32> to vector<1x64xf32>
    %180 = vector.extract_strided_slice %178 {offsets = [0, 0], sizes = [1, 64], strides = [1, 1]} : vector<1x96xf32> to vector<1x64xf32>
    %181 = arith.addf %179, %180 : vector<1x64xf32>
    %182 = arith.negf %181 : vector<1x64xf32>
    %183 = math.exp %182 : vector<1x64xf32>
    %cst_52 = arith.constant 1.000000e+00 : f32
    %184 = vector.broadcast %cst_52 : f32 to vector<1x64xf32>
    %185 = arith.addf %184, %183 : vector<1x64xf32>
    %186 = arith.divf %184, %185 : vector<1x64xf32>
    %187 = vector.extract_strided_slice %186 {offsets = [0, 0], sizes = [1, 32], strides = [1, 1]} : vector<1x64xf32> to vector<1x32xf32>
    %188 = vector.extract_strided_slice %186 {offsets = [0, 32], sizes = [1, 32], strides = [1, 1]} : vector<1x64xf32> to vector<1x32xf32>
    %189 = vector.extract_strided_slice %176 {offsets = [0, 64], sizes = [1, 32], strides = [1, 1]} : vector<1x96xf32> to vector<1x32xf32>
    %190 = vector.extract_strided_slice %178 {offsets = [0, 64], sizes = [1, 32], strides = [1, 1]} : vector<1x96xf32> to vector<1x32xf32>
    %191 = arith.mulf %187, %190 : vector<1x32xf32>
    %192 = arith.addf %189, %191 : vector<1x32xf32>
    %193 = math.tanh %192 : vector<1x32xf32>
    %cst_53 = arith.constant 1.000000e+00 : f32
    %194 = vector.broadcast %cst_53 : f32 to vector<1x32xf32>
    %195 = arith.subf %194, %188 : vector<1x32xf32>
    %196 = arith.mulf %195, %193 : vector<1x32xf32>
    %197 = arith.mulf %188, %175 : vector<1x32xf32>
    %198 = arith.addf %196, %197 : vector<1x32xf32>
    %199 = vector.extract_strided_slice %34 {offsets = [7, 0], sizes = [1, 96], strides = [1, 1]} : vector<8x96xf32> to vector<1x96xf32>
    %cst_54 = arith.constant dense<0.000000e+00> : vector<1x96xf32>
    %200 = tpu.matmul %198, %35, %cst_54 {dimension_numbers = #tpu.dot_dimension_numbers<[1], [0], [0], [1], [0, 0, 1, 1], [], []>} : vector<1x32xf32>, vector<32x96xf32>, vector<1x96xf32> -> vector<1x96xf32>
    %201 = arith.addf %200, %36 : vector<1x96xf32>
    %202 = vector.extract_strided_slice %199 {offsets = [0, 0], sizes = [1, 64], strides = [1, 1]} : vector<1x96xf32> to vector<1x64xf32>
    %203 = vector.extract_strided_slice %201 {offsets = [0, 0], sizes = [1, 64], strides = [1, 1]} : vector<1x96xf32> to vector<1x64xf32>
    %204 = arith.addf %202, %203 : vector<1x64xf32>
    %205 = arith.negf %204 : vector<1x64xf32>
    %206 = math.exp %205 : vector<1x64xf32>
    %cst_55 = arith.constant 1.000000e+00 : f32
    %207 = vector.broadcast %cst_55 : f32 to vector<1x64xf32>
    %208 = arith.addf %207, %206 : vector<1x64xf32>
    %209 = arith.divf %207, %208 : vector<1x64xf32>
    %210 = vector.extract_strided_slice %209 {offsets = [0, 0], sizes = [1, 32], strides = [1, 1]} : vector<1x64xf32> to vector<1x32xf32>
    %211 = vector.extract_strided_slice %209 {offsets = [0, 32], sizes = [1, 32], strides = [1, 1]} : vector<1x64xf32> to vector<1x32xf32>
    %212 = vector.extract_strided_slice %199 {offsets = [0, 64], sizes = [1, 32], strides = [1, 1]} : vector<1x96xf32> to vector<1x32xf32>
    %213 = vector.extract_strided_slice %201 {offsets = [0, 64], sizes = [1, 32], strides = [1, 1]} : vector<1x96xf32> to vector<1x32xf32>
    %214 = arith.mulf %210, %213 : vector<1x32xf32>
    %215 = arith.addf %212, %214 : vector<1x32xf32>
    %216 = math.tanh %215 : vector<1x32xf32>
    %cst_56 = arith.constant 1.000000e+00 : f32
    %217 = vector.broadcast %cst_56 : f32 to vector<1x32xf32>
    %218 = arith.subf %217, %211 : vector<1x32xf32>
    %219 = arith.mulf %218, %216 : vector<1x32xf32>
    %220 = arith.mulf %211, %198 : vector<1x32xf32>
    %221 = arith.addf %219, %220 : vector<1x32xf32>
    %c0_57 = arith.constant 0 : index
    %c0_58 = arith.constant 0 : index
    %222 = vector.load %arg10[%c0_57, %c0_58] : memref<32x2xf32, #tpu.memory_space<vmem>>, vector<32x2xf32>
    %cst_59 = arith.constant dense<0.000000e+00> : vector<1x2xf32>
    %223 = tpu.matmul %221, %222, %cst_59 {dimension_numbers = #tpu.dot_dimension_numbers<[1], [0], [0], [1], [0, 0, 1, 1], [], []>} : vector<1x32xf32>, vector<32x2xf32>, vector<1x2xf32> -> vector<1x2xf32>
    %c0_60 = arith.constant 0 : index
    %c0_61 = arith.constant 0 : index
    %224 = vector.load %arg11[%c0_60, %c0_61] : memref<1x2xf32, #tpu.memory_space<vmem>>, vector<1x2xf32>
    %225 = arith.addf %223, %224 : vector<1x2xf32>
    %c0_62 = arith.constant 0 : index
    %c0_63 = arith.constant 0 : index
    %c0_64 = arith.constant 0 : index
    %226 = vector.load %arg12[%c0_62, %c0_63, %c0_64] : memref<1x1x2xf32, #tpu.memory_space<vmem>>, vector<1x1x2xf32>
    %227 = vector.shape_cast %226 : vector<1x1x2xf32> to vector<1x2xf32>
    %228 = vector.shape_cast %225 : vector<1x2xf32> to vector<1x1x2xf32>
    tpu.vector_store %arg12[%c0_62, %c0_63, %c0_64], %228 {strides = array<i32>} : memref<1x1x2xf32, #tpu.memory_space<vmem>>, vector<1x1x2xf32>,
    return
  }
  func.func @transform_0(%arg0: i32) -> (i32, i32, i32) {
    %c0_i32 = arith.constant 0 : i32
    %c0_i32_0 = arith.constant 0 : i32
    %c0_i32_1 = arith.constant 0 : i32
    return %arg0, %c0_i32, %c0_i32_0 : i32, i32, i32
  }
  func.func @transform_1(%arg0: i32) -> (i32, i32) {
    %c0_i32 = arith.constant 0 : i32
    %c0_i32_0 = arith.constant 0 : i32
    %c0_i32_1 = arith.constant 0 : i32
    return %c0_i32, %c0_i32_0 : i32, i32
  }
  func.func @transform_2(%arg0: i32) -> (i32, i32) {
    %c0_i32 = arith.constant 0 : i32
    %c0_i32_0 = arith.constant 0 : i32
    %c0_i32_1 = arith.constant 0 : i32
    return %c0_i32, %c0_i32_0 : i32, i32
  }
  func.func @transform_3(%arg0: i32) -> (i32, i32) {
    %c0_i32 = arith.constant 0 : i32
    %c0_i32_0 = arith.constant 0 : i32
    %c0_i32_1 = arith.constant 0 : i32
    return %c0_i32, %c0_i32_0 : i32, i32
  }
  func.func @transform_4(%arg0: i32) -> (i32, i32) {
    %c0_i32 = arith.constant 0 : i32
    %c0_i32_0 = arith.constant 0 : i32
    %c0_i32_1 = arith.constant 0 : i32
    return %c0_i32, %c0_i32_0 : i32, i32
  }
  func.func @transform_5(%arg0: i32) -> (i32, i32) {
    %c0_i32 = arith.constant 0 : i32
    %c0_i32_0 = arith.constant 0 : i32
    %c0_i32_1 = arith.constant 0 : i32
    return %c0_i32, %c0_i32_0 : i32, i32
  }
  func.func @transform_6(%arg0: i32) -> (i32, i32) {
    %c0_i32 = arith.constant 0 : i32
    %c0_i32_0 = arith.constant 0 : i32
    %c0_i32_1 = arith.constant 0 : i32
    return %c0_i32, %c0_i32_0 : i32, i32
  }
  func.func @transform_7(%arg0: i32) -> (i32, i32) {
    %c0_i32 = arith.constant 0 : i32
    %c0_i32_0 = arith.constant 0 : i32
    %c0_i32_1 = arith.constant 0 : i32
    return %c0_i32, %c0_i32_0 : i32, i32
  }
  func.func @transform_8(%arg0: i32) -> (i32, i32) {
    %c0_i32 = arith.constant 0 : i32
    %c0_i32_0 = arith.constant 0 : i32
    %c0_i32_1 = arith.constant 0 : i32
    return %c0_i32, %c0_i32_0 : i32, i32
  }
  func.func @transform_9(%arg0: i32) -> (i32, i32) {
    %c0_i32 = arith.constant 0 : i32
    %c0_i32_0 = arith.constant 0 : i32
    %c0_i32_1 = arith.constant 0 : i32
    return %c0_i32, %c0_i32_0 : i32, i32
  }
  func.func @transform_10(%arg0: i32) -> (i32, i32) {
    %c0_i32 = arith.constant 0 : i32
    %c0_i32_0 = arith.constant 0 : i32
    %c0_i32_1 = arith.constant 0 : i32
    return %c0_i32, %c0_i32_0 : i32, i32
  }
  func.func @transform_11(%arg0: i32) -> (i32, i32, i32) {
    %c0_i32 = arith.constant 0 : i32
    %c0_i32_0 = arith.constant 0 : i32
    %c0_i32_1 = arith.constant 0 : i32
    return %arg0, %c0_i32, %c0_i32_0 : i32, i32, i32
  }
}

</mosaic_0001>

<bundles_post_ra>
// kernel: tpu_custom_call.1
= control target key start
LH: loop header
LB: loop body
LE: loop exit
PB: predicated region body
PF: predicated region fallthrough
CT: control target
= control target key end

     0   :  { %s2568_s0 = inlined_call_operand.vmem [shape: f32[2,8,4], index: 0, kind: input, shape index: {}]   ;;  %s2569_s1 = inlined_call_operand.vmem [shape: f32[12,32], index: 1, kind: input, shape index: {}]   ;;  %s2570_s2 = inlined_call_operand.vmem [shape: f32[1,32], index: 2, kind: input, shape index: {}]   ;;  %s2571_s3 = inlined_call_operand.vmem [shape: f32[96,32], index: 3, kind: input, shape index: {}]   ;;  %s2572_s4 = inlined_call_operand.vmem [shape: f32[1,32], index: 4, kind: input, shape index: {}]   ;;  %s2573_s5 = inlined_call_operand.vmem [shape: f32[32,96], index: 5, kind: input, shape index: {}]   ;;  %s2574_s6 = inlined_call_operand.vmem [shape: f32[32,96], index: 6, kind: input, shape index: {}]   ;;  %s2575_s7 = inlined_call_operand.vmem [shape: f32[1,96], index: 7, kind: input, shape index: {}]   ;;  %s2576_s8 = inlined_call_operand.vmem [shape: f32[1,96], index: 8, kind: input, shape index: {}]   ;;  %s2577_s9 = inlined_call_operand.vmem [shape: f32[32,2], index: 9, kind: input, shape index: {}]   ;;  %s2578_s10 = inlined_call_operand.vmem [shape: f32[1,2], index: 10, kind: input, shape index: {}]   ;;  %s2579_s11 = inlined_call_operand.hbm [shape: f32[2,1,2], index: 11, kind: output, shape index: {}]  }
   0x1   :  { %2580 = sst [smem:[#allocation6_spill]] %s2568_s0 }
   0x2   :  { %16 = vsyncpa [#allocation4], 0 }
   0x3   :  { %18 = vsyncpa [#allocation4 + $0x1], 0  ;;  %s2173_s17 = smov 0   ;;  %s2175_s18 = smov 0  }
   0x4   :  { %s2177_s19 = smov 0   ;;  %s2179_s20 = smov 0  }
   0x5 LB: > { %s2194_s21 = sadd.s32 4294967295, %s2103_s20   ;;  %s1708_s22 = sadd.s32 4294967294, %s2103_s20   ;;  %s2103_s20 = sphi %s2179_s20, %s2587_s20   ;;  %s2099_s19 = sphi %s2177_s19, %s2586_s19   ;;  %s2095_s18 = sphi %s2175_s18, %s2585_s18   ;;  %s2091_s17 = sphi %s2173_s17, %s2584_s17  }
   0x6   : > { %s2198_s23 = sadd.s32 1, %s2103_s20   ;;  %s267_s24 = sadd.s32 1, %s2099_s19 }
   0x7   : > { %s264_s25 = ssub.s32 %s2103_s20, %s2198_s23  ;;  %p277_p0 = scmp.ne.s32.totalorder %s2099_s19, %s2095_s18 }
   0x8   : > { %p265_p1 = scmp.eq.s32.totalorder %s264_s25, 0  ;;  %p278_p2 = scmp.eq.s32.totalorder %s2194_s21, 1 }
   0x9   : > { %p283_p3 = scmp.ne.s32.totalorder %s2095_s18, %s2091_s17  ;;  %p284_p4 = scmp.eq.s32.totalorder %s1708_s22, 1 }
   0xa   : > { %s2209_s26 = scalar_select %p265_p1, %s2099_s19, %s267_s24  }
   0xb   : > { %p2211_p5 = por %p278_p2, %p277_p0  ;;  %p2215_p6 = por %p284_p4, %p283_p3 }
   0xc   : > { %p1711_p7 = scmp.ge.s32.totalorder %s2103_s20, 1  ;;  %p339_p8 = scmp.lt.s32.totalorder %s2103_s20, 3 }
   0xe   : > { %p340_p9 = pnand %p1711_p7, %p339_p8 }
   0xf   : > { %p377_p10 = scmp.lt.s32.totalorder (!%p340_p9), %s2194_s21, 1  ;;  %s2583_s0 = sld [smem:[#allocation6_spill]] (!%p340_p9) }
  0x10   : > { %343 = sbr.rel (%p340_p9) target bundleno = 6346 (0x18ca), region = 64  ;;  %s2107_s25 = smov (!%p340_p9), 4  }
  0x11   : > { %s2110_s12 = smov (!%p340_p9), 32   ;;  %s2111_s13 = smov (!%p340_p9), 96  }
  0x12   : > { %s1736_s16 = sshll.u32 (!%p340_p9), %s2194_s21, 4 }
  0x15   : > { %vm381_vm0 = vcmask 261120   ;;  %vm384_vm1 = vcmask 253952   ;;  %v2105_v0 = vmov 0.0   ;;  %s378_s29 = scalar_select %p377_p10, %s2194_s21, 1  ;;  %vm387_vm2 = vcmask 31744   ;;  %v389_v3 = vld [vmem:[%s2569_s1] sm:$0xff] }
  0x16   : > { %383 = vst.msk [vmem:[#allocation2 + $0x8] sm:$0xff] %vm381_vm0, %v2105_v0  ;;  %382 = vst.msk [vmem:[#allocation2] sm:$0xff] %vm381_vm0, %v2105_v0  ;;  %1805 = vmatprep.subr.mxu0 %v2105_v0  ;;  %1812 = vmatprep.subr.mxu1 %v2105_v0  ;;  %v390_v2 = vld [vmem:[%s2569_s1 + $0x8] sm:$0xf]  ;;  %vm431_vm3 = vcmask 1043456   ;;  %vm2106_vm4 = vmmov 0  }
  0x17   : > { %385 = vst.msk [vmem:[#allocation2 + $0x10] sm:$0x1] %vm384_vm1, %v2105_v0  ;;  %s1712_s30 = sshll.u32 %s378_s29, 3  ;;  %1806 = vmatpush3.msk.msra.mxu0 %vm431_vm3, %v390_v2  ;;  %1809 = vmatprep.mubr.msk.f32.mxu0 %vm2106_vm4, %v2105_v0  ;;  %vm401_vm5 = vcmask 1045504   ;;  %s2108_s29 = smov 8   ;;  %vm413_vm6 = vcmask 64512  }
  0x18   : > { %s380_s14 = scalar_lea.vmem %s2583_s0, %s1712_s30  ;;  %1807 = vmatprep.subr.mxu0 %v2105_v0  ;;  %1836 = vmatprep.mubr.msk.f32.mxu1 %vm2106_vm4, %v2105_v0  ;;  %vm424_vm7 = vcmask 1040384   ;;  %vm428_vm8 = vcmask 97280   ;;  %v518_v21 = vld [vmem:[%s2571_s3 + $0x58] sm:$0xff]  ;;  %v517_v22 = vld [vmem:[%s2571_s3 + $0x50] sm:$0xff]  ;;  %v516_v23 = vld [vmem:[%s2571_s3 + $0x48] sm:$0xff]  ;;  %s2109_s30 = smov 64  }
  0x19   : > { %v386_v1 = vld [vmem:[%s380_s14] sm:$0xff]  ;;  %1808 = vmatpush3.msra.mxu0 %v389_v3  ;;  %1813 = vmatpush3.msra.mxu1 %v518_v21  ;;  %v514_v25 = vld [vmem:[%s2571_s3 + $0x38] sm:$0xff]  ;;  %v513_v26 = vld [vmem:[%s2571_s3 + $0x30] sm:$0xff]  ;;  %vm540_vm9 = vcmask 523264   ;;  %vm554_vm10 = vcmask 785408   ;;  %vm1638_vm11 = vcmask 8192  }
  0x1a   : > { %388 = vst.msk [vmem:[#allocation2 + $0x8] sm:$0xff] %vm387_vm2, %v386_v1  ;;  %1839 = vmatprep.subr.mxu0 %v2105_v0  ;;  %1814 = vmatprep.subr.mxu1 %v2105_v0  ;;  %v515_v24 = vld [vmem:[%s2571_s3 + $0x40] sm:$0xff]  ;;  %v512_v27 = vld [vmem:[%s2571_s3 + $0x28] sm:$0xff]  ;;  %v510_v33 = vld [vmem:[%s2571_s3 + $0x18] sm:$0xff]  ;;  %s2112_s21 = smov [#allocation3]  }
  0x1b   : > { %1815 = vmatpush3.msra.mxu1 %v517_v22  ;;  %v511_v28 = vld [vmem:[%s2571_s3 + $0x20] sm:$0xff]  ;;  %v509_v35 = vld [vmem:[%s2571_s3 + $0x10] sm:$0xff]  ;;  %v508_v36 = vld [vmem:[%s2571_s3 + $0x8] sm:$0xff]  ;;  %s2047_s14 = sshll.u32 %s2112_s21, 4  ;;  %s2048_s14 = int_to_ptr.vmem [resolvable:$false] %s2047_s14 }
  0x1c   : > { %1816 = vmatprep.subr.mxu1 %v2105_v0  ;;  %v1713_v29 = vld [vmem:[%s2570_s2] ss:$0 sm:$0xff]  ;;  %v631_v38 = vld [vmem:[%s2573_s5 + $0x18] sm:$0xff]  ;;  %v630_v39 = vld [vmem:[%s2573_s5 + $0x10] sm:$0xff]  ;;  %s2049_s15 = scalar_lea.vmem %s2048_s14, 32 }
  0x1d   : > { %v2247_v11 = vld [vmem:[#allocation2] sm:$0xff]  ;;  %1817 = vmatpush3.msra.mxu1 %v516_v23  ;;  %v629_v56 = vld [vmem:[%s2573_s5 + $0x8] sm:$0xff]  ;;  %v2335_v58 = vld [vmem:[%s2574_s6 + $0x18] sm:$0xff] }
  0x1e   : > { %v394_v4 = vld [vmem:[#allocation2 + $0x10] sm:$0x1]  ;;  %1818 = vmatprep.subr.mxu1 %v2105_v0  ;;  %v507_v37 = vld [vmem:[%s2571_s3] sm:$0xff]  ;;  %v2348_v60 = vld [vmem:[%s2574_s6 + $0x8] sm:$0xff] }
  0x1f   : > { %v403_v5 = vrot.slane %v394_v4, 2  ;;  %1819 = vmatpush3.msra.mxu1 %v515_v24  ;;  %v522_v40 = vld [vmem:[#allocation2 + $0x10] sm:$0x1]  ;;  %v628_v57 = vld [vmem:[%s2573_s5] sm:$0xff] }
  0x20   : > { %1820 = vmatprep.subr.mxu1 %v2105_v0  ;;  %v530_v44 = vrot.slane %v522_v40, 2  ;;  %v2342_v59 = vld [vmem:[%s2574_s6 + $0x10] sm:$0xff]  ;;  %v2355_v61 = vld [vmem:[%s2574_s6] sm:$0xff] }
  0x21   : > { %v393_v6 = vld [vmem:[#allocation2 + $0x8] sm:$0xff]  ;;  %1821 = vmatpush3.msra.mxu1 %v514_v25  ;;  %v1716_v62 = vld [vmem:[%s2572_s4] ss:$0 sm:$0xff] }
  0x22   : > { %v396_v7 = vrot.slane %v393_v6, 1  ;;  %v402_v8 = vrot.slane %v393_v6, 2  ;;  %1822 = vmatprep.subr.mxu1 %v2105_v0 }
  0x23   : > { %1823 = vmatpush3.msra.mxu1 %v513_v26 }
  0x24   : > { %397 = vrot.lane.b32.xlu0 %v396_v7, %s2107_s25  ;;  %v404_v9 = vsel %vm401_vm5, %v402_v8, %v403_v5  ;;  %1824 = vmatprep.subr.mxu1 %v2105_v0 }
  0x25   : > { %407 = vrot.lane.b32.xlu1 %v404_v9, %s2108_s29  ;;  %1825 = vmatpush3.msra.mxu1 %v512_v27 }
  0x26   : > { %1826 = vmatprep.subr.mxu1 %v2105_v0 }
  0x27   : > { %1827 = vmatpush3.msra.mxu1 %v511_v28 }
  0x28   : > { %405 = vrot.lane.b32.xlu0 %v402_v8, %s2108_s29  ;;  %1828 = vmatprep.subr.mxu1 %v2105_v0  ;;  %s2533_s29 = scalar_lea.hbm %s2579_s11, %s1736_s16 }
  0x29   : > { %1829 = vmatpush3.msra.mxu1 %v510_v33 }
  0x2a   : > { %1830 = vmatprep.subr.mxu1 %v2105_v0 }
  0x2b   : > { %1831 = vmatpush3.msra.mxu1 %v509_v35 }
  0x2c   : > { %1832 = vmatprep.subr.mxu1 %v2105_v0 }
  0x2d   : > { %1833 = vmatpush3.msra.mxu1 %v508_v36 }
  0x2e   : > { %1834 = vmatprep.subr.mxu1 %v2105_v0 }
  0x2f   : > { %1835 = vmatpush3.msra.mxu1 %v507_v37 }
  0x30   : > { %1872 = vmatprep.subr.mxu1 %v2105_v0 }
  0x96   : > { %v398_v10 = vpop.permute.xlu0 %397 }
  0x97   : > { %v412_v12 = vsel %vm387_vm2, %v393_v6, %v398_v10  ;;  %v408_v13 = vpop.permute.xlu1 %407  ;;  %v411_v15 = vsel %vm387_vm2, %v2247_v11, %v398_v10  ;;  %v2388_v6 = vld [vmem:[%s2576_s8] sm:$0x1] }
  0x98   : > { %v415_v14 = vsel %vm413_vm6, %v412_v12, %v408_v13  ;;  %v1718_v10 = vld [vmem:[%s2575_s7] ss:$0 sm:$0xff] }
  0x99   : > { %v426_v18 = vrot.slane %v415_v14, 7 }
  0x9a   : > { %v406_v16 = vpop.permute.xlu0 %405 }
  0x9b   : > { %v414_v17 = vsel %vm413_vm6, %v411_v15, %v406_v16 }
  0x9c   : > { %v425_v19 = vrot.slane %v414_v17, 7 }
  0x9e   : > { %v427_v20 = vsel %vm424_vm7, %v425_v19, %v426_v18 }
  0x9f   : > { %1810 = vmatmul.mubr.msk.f32.vlgmr.msra.gmra.mxu0 %vm428_vm8, %v427_v20 }
  0xa0   : > { %1847 = vmatprep.mubr.msk.f32.mxu0 %vm2106_vm4, %v2105_v0  ;;  %1840 = vmatpush3.msra.mxu0 %v631_v38 }
  0xa1   : > { %1841 = vmatprep.subr.mxu0 %v2105_v0 }
  0xa2   : > { %1842 = vmatpush3.msra.mxu0 %v630_v39 }
  0xa3   : > { %1843 = vmatprep.subr.mxu0 %v2105_v0 }
  0xa4   : > { %1844 = vmatpush3.msra.mxu0 %v629_v56 }
  0xa5   : > { %1845 = vmatprep.subr.mxu0 %v2105_v0 }
  0xa6   : > { %1846 = vmatpush3.msra.mxu0 %v628_v57 }
  0xa7   : > { %1850 = vmatprep.subr.mxu0 %v2105_v0 }
 0x15f   : > { %v501_v30 = vpop.f32.mrf.mxu0 }
 0x160   : > { %v502_v31 = vadd.f32 %v1713_v29, %v501_v30 }
 0x161   : > { %v1811_v32 = vpop.f32.mrf.mxu0 }
 0x162   : > { %v505_v34 = vmax.f32 %v502_v31, 0.0 }
 0x164   : > { %506 = vst.msk [vmem:[#allocation2 + $0x8] sm:$0xff] %vm381_vm0, %v505_v34 }
 0x16b   : > { %v521_v41 = vld [vmem:[#allocation2 + $0x8] sm:$0xff] }
 0x16c   : > { %v529_v42 = vrot.slane %v521_v41, 2  ;;  %v524_v43 = vrot.slane %v521_v41, 1 }
 0x16e   : > { %532 = vrot.lane.b32.xlu0 %v529_v42, %s2109_s30  ;;  %525 = vrot.lane.b32.xlu1 %v524_v43, %s2110_s12  ;;  %v531_v45 = vsel %vm401_vm5, %v529_v42, %v530_v44  ;;  %s375_s12 = sand.u32 1, %s2095_s18  }
 0x16f   : > { %s376_s22 = scalar_lea.vmem [#allocation3], %s375_s12 }
 0x170   : > { %s1653_s24 = sshll.u32 %s376_s22, 4  ;;  %s1654_s24 = int_to_ptr.vmem [resolvable:$true] %s1653_s24 }
 0x171   : > { %s2043_s0 = scalar_lea.vmem %s1654_s24, 16  ;;  %p2050_p0 = scmp.lt.s32.totalorder %s1654_s24, %s2048_s14 }
 0x172   : > { %534 = vrot.lane.b32.xlu1 %v531_v45, %s2109_s30  ;;  %p2044_p11 = scmp.ne.s32.totalorder %s1654_s24, %s2043_s0  ;;  %p2051_p1 = scmp.lt.s32.totalorder %s2049_s15, %s2043_s0 }
 0x174   : > { %p2045_p12 = pnand %p2044_p11, %p2211_p5  ;;  %p2052_p2 = por %p2051_p1, %p2050_p0 }
 0x176   : > { %p2046_p13 = pneg %p2045_p12 }
 0x178   : > { %p2053_p3 = pnand %p2052_p2, %p2046_p13 }
 0x1e0   : > { %v533_v46 = vpop.permute.xlu0 %532  ;;  %v526_v47 = vpop.permute.xlu1 %525 }
 0x1e1   : > { %v538_v48 = vsel %vm381_vm0, %v2247_v11, %v526_v47  ;;  %v539_v50 = vsel %vm381_vm0, %v521_v41, %v526_v47 }
 0x1e2   : > { %v541_v49 = vsel %vm540_vm9, %v538_v48, %v533_v46 }
 0x1e3   : > { %v551_v53 = vrot.slane %v541_v49, 7 }
 0x1e4   : > { %v535_v51 = vpop.permute.xlu1 %534 }
 0x1e5   : > { %v542_v52 = vsel %vm540_vm9, %v539_v50, %v535_v51 }
 0x1e6   : > { %v552_v54 = vrot.slane %v542_v52, 7 }
 0x1e8   : > { %v553_v55 = vsel %vm424_vm7, %v551_v53, %v552_v54 }
 0x1e9   : > { %1837 = vmatmul.mubr.msk.f32.vlgmr.msra.gmra.mxu1 %vm554_vm10, %v553_v55 }
 0x1ea   : > { %1880 = vmatprep.mubr.msk.f32.mxu1 %vm2106_vm4, %v2105_v0  ;;  %1873 = vmatpush3.msra.mxu1 %v2335_v58 }
 0x1eb   : > { %1874 = vmatprep.subr.mxu1 %v2105_v0 }
 0x1ec   : > { %1875 = vmatpush3.msra.mxu1 %v2342_v59 }
 0x1ed   : > { %1876 = vmatprep.subr.mxu1 %v2105_v0 }
 0x1ee   : > { %1877 = vmatpush3.msra.mxu1 %v2348_v60 }
 0x1ef   : > { %1878 = vmatprep.subr.mxu1 %v2105_v0 }
 0x1f0   : > { %1879 = vmatpush3.msra.mxu1 %v2355_v61 }
 0x1f1   : > { %1894 = vmatprep.subr.mxu1 %v2105_v0 }
 0x2a9   : > { %v623_v63 = vpop.f32.mrf.mxu1 }
 0x2aa   : > { %v624_v1 = vadd.f32 %v1716_v62, %v623_v63 }
 0x2ab   : > { %v1838_v2 = vpop.f32.mrf.mxu1 }
 0x2ac   : > { %v627_v3 = vmax.f32 %v624_v1, 0.0 }
 0x2ae   : > { %1848 = vmatmul.mubr.msk.f32.vlgmr.msra.gmra.mxu0 %vm381_vm0, %v627_v3 }
 0x2af   : > { %1851 = vmatpush3.msra.mxu0 %v2335_v58  ;;  %1858 = vmatprep.mubr.msk.f32.mxu0 %vm2106_vm4, %v2105_v0 }
 0x2b0   : > { %1852 = vmatprep.subr.mxu0 %v2105_v0 }
 0x2b1   : > { %1853 = vmatpush3.msra.mxu0 %v2342_v59 }
 0x2b2   : > { %1854 = vmatprep.subr.mxu0 %v2105_v0 }
 0x2b3   : > { %1855 = vmatpush3.msra.mxu0 %v2348_v60 }
 0x2b4   : > { %1856 = vmatprep.subr.mxu0 %v2105_v0 }
 0x2b5   : > { %1857 = vmatpush3.msra.mxu0 %v2355_v61 }
 0x2b6   : > { %1859 = vmatmul.mubr.f32.vlgmr.msra.gmra.mxu0 %v2105_v0  ;;  %1861 = vmatprep.subr.mxu0 %v2105_v0 }
 0x2b7   : > { %1862 = vmatpush3.msra.mxu0 %v2335_v58  ;;  %1869 = vmatprep.mubr.msk.f32.mxu0 %vm2106_vm4, %v2105_v0 }
 0x2b8   : > { %1863 = vmatprep.subr.mxu0 %v2105_v0 }
 0x2b9   : > { %1864 = vmatpush3.msra.mxu0 %v2342_v59 }
 0x2ba   : > { %1865 = vmatprep.subr.mxu0 %v2105_v0 }
 0x2bb   : > { %1866 = vmatpush3.msra.mxu0 %v2348_v60 }
 0x2bc   : > { %1867 = vmatprep.subr.mxu0 %v2105_v0 }
 0x2bd   : > { %1868 = vmatpush3.msra.mxu0 %v2355_v61 }
 0x2be   : > { %1883 = vmatprep.subr.mxu0 %v2105_v0 }
 0x36e   : > { %v708_v4 = vpop.f32.mrf.mxu0 }
 0x36f   : > { %v2395_v11 = vadd.f32 %v1718_v10, %v708_v4 }
 0x370   : > { %v1849_v5 = vpop.f32.mrf.mxu0 }
 0x376   : > { %v786_v7 = vpop.f32.mrf.mxu0 }
 0x377   : > { %v787_v8 = vadd.f32 %v786_v7, %v2388_v6 }
 0x378   : > { %v1860_v9 = vpop.f32.mrf.mxu0 }
 0x379   : > { %798 = vrot.lane.b32.xlu0 %v787_v8, %s2109_s30  ;;  %v790_v12 = vadd.f32 %v787_v8, %v2395_v11 }
 0x37b   : > { %v1720_v13 = vmul.f32 -1.442695, %v790_v12 }
 0x37d   : > { %1995 = vpow2.f32 %v1720_v13 }
 0x38a   : > { %v1996_v14 = vpop.eup %1995 }
 0x38b   : > { %v794_v15 = vadd.f32 1.0, %v1996_v14 }
 0x38d   : > { %1997 = vrcp.f32 %v794_v15 }
 0x39a   : > { %v1998_v16 = vpop.eup %1997 }
 0x39b   : > { %v808_v22 = vsub.f32 1.0, %v1998_v16  ;;  %v814_v24 = vmul.f32 0.0, %v1998_v16 }
 0x3eb   : > { %v799_v17 = vpop.permute.xlu0 %798 }
 0x3ec   : > { %v801_v18 = vmul.f32 %v1998_v16, %v799_v17 }
 0x3ee   : > { %803 = vrot.lane.b32.xlu1 %v801_v18, %s2109_s30 }
 0x460   : > { %v804_v19 = vpop.permute.xlu1 %803 }
 0x461   : > { %v806_v20 = vadd.f32 %v804_v19, %v2395_v11 }
 0x463   : > { %1999 = vtanh.f32 %v806_v20 }
 0x470   : > { %v2000_v21 = vpop.eup %1999 }
 0x471   : > { %810 = vrot.lane.b32.xlu0 %v2000_v21, %s2111_s13 }
 0x4e3   : > { %v811_v23 = vpop.permute.xlu0 %810 }
 0x4e4   : > { %v813_v25 = vmul.f32 %v811_v23, %v808_v22 }
 0x4e6   : > { %v815_v26 = vadd.f32 %v814_v24, %v813_v25 }
 0x4e8   : > { %817 = vrot.lane.b32.xlu1 %v815_v26, %s2111_s13  ;;  %v917_v42 = vrot.slane %v815_v26, 7 }
 0x55a   : > { %v818_v27 = vpop.permute.xlu1 %817 }
 0x55b   : > { %1870 = vmatmul.mubr.msk.f32.vlgmr.msra.gmra.mxu0 %vm381_vm0, %v818_v27 }
 0x55c   : > { %1884 = vmatpush3.msra.mxu0 %v2335_v58  ;;  %1891 = vmatprep.mubr.msk.f32.mxu0 %vm2106_vm4, %v2105_v0 }
 0x55d   : > { %1885 = vmatprep.subr.mxu0 %v2105_v0 }
 0x55e   : > { %1886 = vmatpush3.msra.mxu0 %v2342_v59 }
 0x55f   : > { %1887 = vmatprep.subr.mxu0 %v2105_v0 }
 0x560   : > { %1888 = vmatpush3.msra.mxu0 %v2348_v60 }
 0x561   : > { %1889 = vmatprep.subr.mxu0 %v2105_v0 }
 0x562   : > { %1890 = vmatpush3.msra.mxu0 %v2355_v61 }
 0x563   : > { %1905 = vmatprep.subr.mxu0 %v2105_v0 }
 0x61b   : > { %v887_v28 = vpop.f32.mrf.mxu0 }
 0x61c   : > { %v888_v29 = vadd.f32 %v887_v28, %v2388_v6 }
 0x61d   : > { %v1871_v30 = vpop.f32.mrf.mxu0 }
 0x61e   : > { %v892_v31 = vrot.slane %v888_v29, 7 }
 0x620   : > { %901 = vrot.lane.b32.xlu0 %v892_v31, %s2109_s30  ;;  %v894_v32 = vadd.f32 %v892_v31, %v2395_v11 }
 0x622   : > { %v1722_v33 = vmul.f32 -1.442695, %v894_v32 }
 0x624   : > { %2001 = vpow2.f32 %v1722_v33 }
 0x631   : > { %v2002_v34 = vpop.eup %2001 }
 0x632   : > { %v898_v35 = vadd.f32 1.0, %v2002_v34 }
 0x634   : > { %2003 = vrcp.f32 %v898_v35 }
 0x641   : > { %v2004_v36 = vpop.eup %2003 }
 0x642   : > { %v911_v43 = vsub.f32 1.0, %v2004_v36  ;;  %v919_v45 = vmul.f32 %v2004_v36, %v917_v42 }
 0x692   : > { %v902_v37 = vpop.permute.xlu0 %901 }
 0x693   : > { %v904_v38 = vmul.f32 %v2004_v36, %v902_v37 }
 0x695   : > { %906 = vrot.lane.b32.xlu1 %v904_v38, %s2109_s30 }
 0x707   : > { %v907_v39 = vpop.permute.xlu1 %906 }
 0x708   : > { %v909_v40 = vadd.f32 %v907_v39, %v2395_v11 }
 0x70a   : > { %2005 = vtanh.f32 %v909_v40 }
 0x717   : > { %v2006_v41 = vpop.eup %2005 }
 0x718   : > { %913 = vrot.lane.b32.xlu0 %v2006_v41, %s2111_s13 }
 0x78a   : > { %v914_v44 = vpop.permute.xlu0 %913 }
 0x78b   : > { %v916_v46 = vmul.f32 %v914_v44, %v911_v43 }
 0x78d   : > { %v920_v47 = vadd.f32 %v919_v45, %v916_v46 }
 0x78f   : > { %v922_v48 = vrot.slane %v920_v47, 1  ;;  %v1023_v5 = vrot.slane %v920_v47, 7 }
 0x791   : > { %923 = vrot.lane.b32.xlu1 %v922_v48, %s2111_s13 }
 0x803   : > { %v924_v49 = vpop.permute.xlu1 %923 }
 0x804   : > { %1881 = vmatmul.mubr.msk.f32.vlgmr.msra.gmra.mxu1 %vm381_vm0, %v924_v49 }
 0x805   : > { %1895 = vmatpush3.msra.mxu1 %v2335_v58  ;;  %1902 = vmatprep.mubr.msk.f32.mxu1 %vm2106_vm4, %v2105_v0 }
 0x806   : > { %1896 = vmatprep.subr.mxu1 %v2105_v0 }
 0x807   : > { %1897 = vmatpush3.msra.mxu1 %v2342_v59 }
 0x808   : > { %1898 = vmatprep.subr.mxu1 %v2105_v0 }
 0x809   : > { %1899 = vmatpush3.msra.mxu1 %v2348_v60 }
 0x80a   : > { %1900 = vmatprep.subr.mxu1 %v2105_v0 }
 0x80b   : > { %1901 = vmatpush3.msra.mxu1 %v2355_v61 }
 0x80c   : > { %1916 = vmatprep.subr.mxu1 %v2105_v0 }
 0x8c4   : > { %v993_v50 = vpop.f32.mrf.mxu1 }
 0x8c5   : > { %v994_v51 = vadd.f32 %v993_v50, %v2388_v6 }
 0x8c6   : > { %v1882_v52 = vpop.f32.mrf.mxu1 }
 0x8c7   : > { %v998_v53 = vrot.slane %v994_v51, 6 }
 0x8c9   : > { %1007 = vrot.lane.b32.xlu0 %v998_v53, %s2109_s30  ;;  %v1000_v54 = vadd.f32 %v998_v53, %v2395_v11 }
 0x8cb   : > { %v1724_v55 = vmul.f32 -1.442695, %v1000_v54 }
 0x8cd   : > { %2007 = vpow2.f32 %v1724_v55 }
 0x8da   : > { %v2008_v56 = vpop.eup %2007 }
 0x8db   : > { %v1004_v57 = vadd.f32 1.0, %v2008_v56 }
 0x8dd   : > { %2009 = vrcp.f32 %v1004_v57 }
 0x8ea   : > { %v2010_v62 = vpop.eup %2009 }
 0x8eb   : > { %v1017_v7 = vsub.f32 1.0, %v2010_v62  ;;  %v1025_v9 = vmul.f32 %v2010_v62, %v1023_v5 }
 0x93b   : > { %v1008_v63 = vpop.permute.xlu0 %1007 }
 0x93c   : > { %v1010_v1 = vmul.f32 %v2010_v62, %v1008_v63 }
 0x93e   : > { %1012 = vrot.lane.b32.xlu1 %v1010_v1, %s2109_s30 }
 0x9b0   : > { %v1013_v2 = vpop.permute.xlu1 %1012 }
 0x9b1   : > { %v1015_v3 = vadd.f32 %v1013_v2, %v2395_v11 }
 0x9b3   : > { %2011 = vtanh.f32 %v1015_v3 }
 0x9c0   : > { %v2012_v4 = vpop.eup %2011 }
 0x9c1   : > { %1019 = vrot.lane.b32.xlu0 %v2012_v4, %s2111_s13 }
 0xa33   : > { %v1020_v8 = vpop.permute.xlu0 %1019 }
 0xa34   : > { %v1022_v10 = vmul.f32 %v1020_v8, %v1017_v7 }
 0xa36   : > { %v1026_v12 = vadd.f32 %v1025_v9, %v1022_v10 }
 0xa38   : > { %v1028_v13 = vrot.slane %v1026_v12, 2  ;;  %v1129_v29 = vrot.slane %v1026_v12, 7 }
 0xa3a   : > { %1029 = vrot.lane.b32.xlu1 %v1028_v13, %s2111_s13 }
 0xaac   : > { %v1030_v14 = vpop.permute.xlu1 %1029 }
 0xaad   : > { %1892 = vmatmul.mubr.msk.f32.vlgmr.msra.gmra.mxu0 %vm381_vm0, %v1030_v14 }
 0xaae   : > { %1906 = vmatpush3.msra.mxu0 %v2335_v58  ;;  %1913 = vmatprep.mubr.msk.f32.mxu0 %vm2106_vm4, %v2105_v0 }
 0xaaf   : > { %1907 = vmatprep.subr.mxu0 %v2105_v0 }
 0xab0   : > { %1908 = vmatpush3.msra.mxu0 %v2342_v59 }
 0xab1   : > { %1909 = vmatprep.subr.mxu0 %v2105_v0 }
 0xab2   : > { %1910 = vmatpush3.msra.mxu0 %v2348_v60 }
 0xab3   : > { %1911 = vmatprep.subr.mxu0 %v2105_v0 }
 0xab4   : > { %1912 = vmatpush3.msra.mxu0 %v2355_v61 }
 0xab5   : > { %1927 = vmatprep.subr.mxu0 %v2105_v0 }
 0xb6d   : > { %v1099_v15 = vpop.f32.mrf.mxu0 }
 0xb6e   : > { %v1100_v16 = vadd.f32 %v1099_v15, %v2388_v6 }
 0xb6f   : > { %v1893_v17 = vpop.f32.mrf.mxu0 }
 0xb70   : > { %v1104_v18 = vrot.slane %v1100_v16, 5 }
 0xb72   : > { %1113 = vrot.lane.b32.xlu0 %v1104_v18, %s2109_s30  ;;  %v1106_v19 = vadd.f32 %v1104_v18, %v2395_v11 }
 0xb74   : > { %v1726_v20 = vmul.f32 -1.442695, %v1106_v19 }
 0xb76   : > { %2013 = vpow2.f32 %v1726_v20 }
 0xb83   : > { %v2014_v21 = vpop.eup %2013 }
 0xb84   : > { %v1110_v22 = vadd.f32 1.0, %v2014_v21 }
 0xb86   : > { %2015 = vrcp.f32 %v1110_v22 }
 0xb93   : > { %v2016_v23 = vpop.eup %2015 }
 0xb94   : > { %v1123_v30 = vsub.f32 1.0, %v2016_v23  ;;  %v1131_v32 = vmul.f32 %v2016_v23, %v1129_v29 }
 0xbe4   : > { %v1114_v24 = vpop.permute.xlu0 %1113 }
 0xbe5   : > { %v1116_v25 = vmul.f32 %v2016_v23, %v1114_v24 }
 0xbe7   : > { %1118 = vrot.lane.b32.xlu1 %v1116_v25, %s2109_s30 }
 0xc59   : > { %v1119_v26 = vpop.permute.xlu1 %1118 }
 0xc5a   : > { %v1121_v27 = vadd.f32 %v1119_v26, %v2395_v11 }
 0xc5c   : > { %2017 = vtanh.f32 %v1121_v27 }
 0xc69   : > { %v2018_v28 = vpop.eup %2017 }
 0xc6a   : > { %1125 = vrot.lane.b32.xlu0 %v2018_v28, %s2111_s13 }
 0xcdc   : > { %v1126_v31 = vpop.permute.xlu0 %1125 }
 0xcdd   : > { %v1128_v33 = vmul.f32 %v1126_v31, %v1123_v30 }
 0xcdf   : > { %v1132_v34 = vadd.f32 %v1131_v32, %v1128_v33 }
 0xce1   : > { %v1134_v35 = vrot.slane %v1132_v34, 3  ;;  %v1235_v51 = vrot.slane %v1132_v34, 7 }
 0xce3   : > { %1135 = vrot.lane.b32.xlu1 %v1134_v35, %s2111_s13 }
 0xd55   : > { %v1136_v36 = vpop.permute.xlu1 %1135 }
 0xd56   : > { %1903 = vmatmul.mubr.msk.f32.vlgmr.msra.gmra.mxu1 %vm381_vm0, %v1136_v36 }
 0xd57   : > { %1917 = vmatpush3.msra.mxu1 %v2335_v58  ;;  %1924 = vmatprep.mubr.msk.f32.mxu1 %vm2106_vm4, %v2105_v0 }
 0xd58   : > { %1918 = vmatprep.subr.mxu1 %v2105_v0 }
 0xd59   : > { %1919 = vmatpush3.msra.mxu1 %v2342_v59 }
 0xd5a   : > { %1920 = vmatprep.subr.mxu1 %v2105_v0 }
 0xd5b   : > { %1921 = vmatpush3.msra.mxu1 %v2348_v60 }
 0xd5c   : > { %1922 = vmatprep.subr.mxu1 %v2105_v0 }
 0xd5d   : > { %1923 = vmatpush3.msra.mxu1 %v2355_v61 }
 0xd5e   : > { %1938 = vmatprep.subr.mxu1 %v2105_v0 }
 0xe16   : > { %v1205_v37 = vpop.f32.mrf.mxu1 }
 0xe17   : > { %v1206_v38 = vadd.f32 %v1205_v37, %v2388_v6 }
 0xe18   : > { %v1904_v39 = vpop.f32.mrf.mxu1 }
 0xe19   : > { %v1210_v40 = vrot.slane %v1206_v38, 4 }
 0xe1b   : > { %1219 = vrot.lane.b32.xlu0 %v1210_v40, %s2109_s30  ;;  %v1212_v41 = vadd.f32 %v1210_v40, %v2395_v11 }
 0xe1d   : > { %v1728_v42 = vmul.f32 -1.442695, %v1212_v41 }
 0xe1f   : > { %2019 = vpow2.f32 %v1728_v42 }
 0xe2c   : > { %v2020_v43 = vpop.eup %2019 }
 0xe2d   : > { %v1216_v44 = vadd.f32 1.0, %v2020_v43 }
 0xe2f   : > { %2021 = vrcp.f32 %v1216_v44 }
 0xe3c   : > { %v2022_v45 = vpop.eup %2021 }
 0xe3d   : > { %v1229_v52 = vsub.f32 1.0, %v2022_v45  ;;  %v1237_v54 = vmul.f32 %v2022_v45, %v1235_v51 }
 0xe8d   : > { %v1220_v46 = vpop.permute.xlu0 %1219 }
 0xe8e   : > { %v1222_v47 = vmul.f32 %v2022_v45, %v1220_v46 }
 0xe90   : > { %1224 = vrot.lane.b32.xlu1 %v1222_v47, %s2109_s30 }
 0xf02   : > { %v1225_v48 = vpop.permute.xlu1 %1224 }
 0xf03   : > { %v1227_v49 = vadd.f32 %v1225_v48, %v2395_v11 }
 0xf05   : > { %2023 = vtanh.f32 %v1227_v49 }
 0xf12   : > { %v2024_v50 = vpop.eup %2023 }
 0xf13   : > { %1231 = vrot.lane.b32.xlu0 %v2024_v50, %s2111_s13 }
 0xf85   : > { %v1232_v53 = vpop.permute.xlu0 %1231 }
 0xf86   : > { %v1234_v55 = vmul.f32 %v1232_v53, %v1229_v52 }
 0xf88   : > { %v1238_v56 = vadd.f32 %v1237_v54, %v1234_v55  ;;  %v1559_v55 = vld [vmem:[%s2577_s9 + $0x10] sm:$0xff] }
 0xf8a   : > { %v1240_v57 = vrot.slane %v1238_v56, 4  ;;  %v1341_v12 = vrot.slane %v1238_v56, 7  ;;  %v1558_v56 = vld [vmem:[%s2577_s9 + $0x8] sm:$0xff] }
 0xf8c   : > { %1241 = vrot.lane.b32.xlu1 %v1240_v57, %s2111_s13 }
 0xffe   : > { %v1242_v62 = vpop.permute.xlu1 %1241 }
 0xfff   : > { %1914 = vmatmul.mubr.msk.f32.vlgmr.msra.gmra.mxu0 %vm381_vm0, %v1242_v62 }
0x1000   : > { %1928 = vmatpush3.msra.mxu0 %v2335_v58  ;;  %1935 = vmatprep.mubr.msk.f32.mxu0 %vm2106_vm4, %v2105_v0 }
0x1001   : > { %1929 = vmatprep.subr.mxu0 %v2105_v0 }
0x1002   : > { %1930 = vmatpush3.msra.mxu0 %v2342_v59 }
0x1003   : > { %1931 = vmatprep.subr.mxu0 %v2105_v0 }
0x1004   : > { %1932 = vmatpush3.msra.mxu0 %v2348_v60 }
0x1005   : > { %1933 = vmatprep.subr.mxu0 %v2105_v0 }
0x1006   : > { %1934 = vmatpush3.msra.mxu0 %v2355_v61 }
0x10bf   : > { %v1311_v63 = vpop.f32.mrf.mxu0 }
0x10c0   : > { %v1312_v1 = vadd.f32 %v1311_v63, %v2388_v6 }
0x10c1   : > { %v1915_v2 = vpop.f32.mrf.mxu0 }
0x10c2   : > { %v1316_v58 = vrot.slane %v1312_v1, 3 }
0x10c4   : > { %1325 = vrot.lane.b32.xlu0 %v1316_v58, %s2109_s30  ;;  %v1318_v3 = vadd.f32 %v1316_v58, %v2395_v11 }
0x10c6   : > { %v1730_v4 = vmul.f32 -1.442695, %v1318_v3 }
0x10c8   : > { %2025 = vpow2.f32 %v1730_v4 }
0x10d5   : > { %v2026_v59 = vpop.eup %2025 }
0x10d6   : > { %v1322_v5 = vadd.f32 1.0, %v2026_v59 }
0x10d8   : > { %2027 = vrcp.f32 %v1322_v5 }
0x10e5   : > { %v2028_v7 = vpop.eup %2027 }
0x10e6   : > { %v1335_v13 = vsub.f32 1.0, %v2028_v7  ;;  %v1343_v15 = vmul.f32 %v2028_v7, %v1341_v12 }
0x1136   : > { %v1326_v60 = vpop.permute.xlu0 %1325 }
0x1137   : > { %v1328_v8 = vmul.f32 %v2028_v7, %v1326_v60 }
0x1139   : > { %1330 = vrot.lane.b32.xlu1 %v1328_v8, %s2109_s30 }
0x11ab   : > { %v1331_v61 = vpop.permute.xlu1 %1330 }
0x11ac   : > { %v1333_v9 = vadd.f32 %v1331_v61, %v2395_v11 }
0x11ae   : > { %2029 = vtanh.f32 %v1333_v9 }
0x11bb   : > { %v2030_v10 = vpop.eup %2029 }
0x11bc   : > { %1337 = vrot.lane.b32.xlu0 %v2030_v10, %s2111_s13 }
0x122e   : > { %v1338_v14 = vpop.permute.xlu0 %1337 }
0x122f   : > { %v1340_v16 = vmul.f32 %v1338_v14, %v1335_v13 }
0x1231   : > { %v1344_v17 = vadd.f32 %v1343_v15, %v1340_v16 }
0x1233   : > { %v1346_v18 = vrot.slane %v1344_v17, 5  ;;  %v1447_v34 = vrot.slane %v1344_v17, 7 }
0x1235   : > { %1347 = vrot.lane.b32.xlu1 %v1346_v18, %s2111_s13 }
0x12a7   : > { %v1348_v19 = vpop.permute.xlu1 %1347 }
0x12a8   : > { %1925 = vmatmul.mubr.msk.f32.vlgmr.msra.gmra.mxu1 %vm381_vm0, %v1348_v19 }
0x12a9   : > { %1946 = vmatprep.mubr.msk.f32.mxu1 %vm2106_vm4, %v2105_v0 }
0x1368   : > { %v1417_v20 = vpop.f32.mrf.mxu1 }
0x1369   : > { %v1418_v21 = vadd.f32 %v1417_v20, %v2388_v6 }
0x136a   : > { %v1926_v22 = vpop.f32.mrf.mxu1 }
0x136b   : > { %v1422_v23 = vrot.slane %v1418_v21, 2 }
0x136d   : > { %1431 = vrot.lane.b32.xlu0 %v1422_v23, %s2109_s30  ;;  %v1424_v24 = vadd.f32 %v1422_v23, %v2395_v11 }
0x136f   : > { %v1732_v25 = vmul.f32 -1.442695, %v1424_v24 }
0x1371   : > { %2031 = vpow2.f32 %v1732_v25 }
0x137e   : > { %v2032_v26 = vpop.eup %2031 }
0x137f   : > { %v1428_v27 = vadd.f32 1.0, %v2032_v26 }
0x1381   : > { %2033 = vrcp.f32 %v1428_v27 }
0x138e   : > { %v2034_v28 = vpop.eup %2033 }
0x138f   : > { %v1441_v35 = vsub.f32 1.0, %v2034_v28  ;;  %v1449_v37 = vmul.f32 %v2034_v28, %v1447_v34 }
0x13df   : > { %v1432_v29 = vpop.permute.xlu0 %1431 }
0x13e0   : > { %v1434_v30 = vmul.f32 %v2034_v28, %v1432_v29 }
0x13e2   : > { %1436 = vrot.lane.b32.xlu1 %v1434_v30, %s2109_s30 }
0x1454   : > { %v1437_v31 = vpop.permute.xlu1 %1436 }
0x1455   : > { %v1439_v32 = vadd.f32 %v1437_v31, %v2395_v11 }
0x1457   : > { %2035 = vtanh.f32 %v1439_v32 }
0x1464   : > { %v2036_v33 = vpop.eup %2035 }
0x1465   : > { %1443 = vrot.lane.b32.xlu0 %v2036_v33, %s2111_s13 }
0x14d7   : > { %v1444_v36 = vpop.permute.xlu0 %1443 }
0x14d8   : > { %v1446_v38 = vmul.f32 %v1444_v36, %v1441_v35 }
0x14da   : > { %v1450_v39 = vadd.f32 %v1449_v37, %v1446_v38 }
0x14dc   : > { %v1452_v40 = vrot.slane %v1450_v39, 6  ;;  %v1553_v62 = vrot.slane %v1450_v39, 7 }
0x14de   : > { %1453 = vrot.lane.b32.xlu1 %v1452_v40, %s2111_s13 }
0x1550   : > { %v1454_v41 = vpop.permute.xlu1 %1453 }
0x1551   : > { %1936 = vmatmul.mubr.msk.f32.vlgmr.msra.gmra.mxu0 %vm381_vm0, %v1454_v41 }
0x1611   : > { %v1523_v42 = vpop.f32.mrf.mxu0 }
0x1612   : > { %v1524_v43 = vadd.f32 %v1523_v42, %v2388_v6  ;;  %v1560_v6 = vld [vmem:[%s2577_s9 + $0x18] sm:$0xff] }
0x1613   : > { %v1937_v44 = vpop.f32.mrf.mxu0  ;;  %1939 = vmatpush3.msra.mxu1 %v1560_v6 }
0x1614   : > { %v1528_v45 = vrot.slane %v1524_v43, 1  ;;  %1940 = vmatprep.subr.mxu1 %v2105_v0 }
0x1615   : > { %1941 = vmatpush3.msra.mxu1 %v1559_v55 }
0x1616   : > { %1537 = vrot.lane.b32.xlu0 %v1528_v45, %s2109_s30  ;;  %v1530_v46 = vadd.f32 %v1528_v45, %v2395_v11  ;;  %1942 = vmatprep.subr.mxu1 %v2105_v0 }
0x1617   : > { %1943 = vmatpush3.msra.mxu1 %v1558_v56 }
0x1618   : > { %v1734_v47 = vmul.f32 -1.442695, %v1530_v46  ;;  %1944 = vmatprep.subr.mxu1 %v2105_v0  ;;  %v1561_v0 = vld [vmem:[%s2578_s10] sm:$0x1] }
0x161a   : > { %2037 = vpow2.f32 %v1734_v47 }
0x1627   : > { %v2038_v48 = vpop.eup %2037 }
0x1628   : > { %v1534_v49 = vadd.f32 1.0, %v2038_v48 }
0x162a   : > { %2039 = vrcp.f32 %v1534_v49 }
0x1637   : > { %v2040_v50 = vpop.eup %2039 }
0x1638   : > { %v1547_v63 = vsub.f32 1.0, %v2040_v50  ;;  %v1555_v2 = vmul.f32 %v2040_v50, %v1553_v62 }
0x1688   : > { %v1538_v51 = vpop.permute.xlu0 %1537 }
0x1689   : > { %v1540_v52 = vmul.f32 %v2040_v50, %v1538_v51 }
0x168b   : > { %1542 = vrot.lane.b32.xlu1 %v1540_v52, %s2109_s30 }
0x16fd   : > { %v1543_v53 = vpop.permute.xlu1 %1542 }
0x16fe   : > { %v1545_v54 = vadd.f32 %v1543_v53, %v2395_v11  ;;  %v1557_v11 = vld [vmem:[%s2577_s9] sm:$0xff] }
0x16ff   : > { %1945 = vmatpush3.msra.mxu1 %v1557_v11 }
0x1700   : > { %2041 = vtanh.f32 %v1545_v54 }
0x170d   : > { %v2042_v57 = vpop.eup %2041 }
0x170e   : > { %1549 = vrot.lane.b32.xlu0 %v2042_v57, %s2111_s13 }
0x1780   : > { %v1550_v1 = vpop.permute.xlu0 %1549 }
0x1781   : > { %v1552_v58 = vmul.f32 %v1550_v1, %v1547_v63 }
0x1783   : > { %v1556_v3 = vadd.f32 %v1555_v2, %v1552_v58 }
0x1785   : > { %v1563_v4 = vrot.slane %v1556_v3, 7 }
0x1787   : > { %1564 = vrot.lane.b32.xlu1 %v1563_v4, %s2111_s13  ;;  %s1641_s13 = scalar_lea.sflag [#allocation4], %s375_s12 }
0x17f9   : > { %v1565_v59 = vpop.permute.xlu1 %1564 }
0x17fa   : > { %1947 = vmatmul.mubr.msk.f32.vlgmr.msra.gmra.mxu1 %vm381_vm0, %v1565_v59 }
0x18ba   : > { %v1634_v5 = vpop.f32.mrf.mxu1 }
0x18bb   : > { %v1635_v7 = vadd.f32 %v1634_v5, %v1561_v0 }
0x18bc   : > { %v1948_v60 = vpop.f32.mrf.mxu1 }
0x18bd   : > { %1639 = vst.msk [vmem:[%s376_s22] sm:$0x1] %vm1638_vm11, %v1635_v7 }
0x18be   : > { %2056 = shalt.err (!%p2053_p3)
}
0x18bf   : > { %s2057_s16 = scalar_lea.hbm %s2533_s29, 16  ;;  %s2061_s25 = scalar_lea.hbm %s2579_s11, 32 }
0x18c0   : > { %p2058_p4 = scmp.ne.s32.totalorder %s2533_s29, %s2057_s16  ;;  %p2062_p9 = scmp.lt.s32.totalorder %s2533_s29, %s2579_s11 }
0x18c1   : > { %p2063_p10 = scmp.lt.s32.totalorder %s2061_s25, %s2057_s16 }
0x18c2   : > { %p2059_p7 = pnand %p2058_p4, %p2211_p5 }
0x18c3   : > { %p2064_p11 = por %p2063_p10, %p2062_p9 }
0x18c4   : > { %p2060_p8 = pneg %p2059_p7 }
0x18c6   : > { %p2065_p12 = pnand %p2064_p11, %p2060_p8 }
0x18c8   : > { %2068 = shalt.err (!%p2065_p12)
}
0x18c9   : > { %1949 = dma.vmem_to_hbm [thread:$0]  (%p2211_p5), %s1654_s24, 16, %s2533_s29, %s1641_s13  }
0x18ca PF: > { %p1955_p13 = scmp.ge.s32.totalorder %s2103_s20, 2  ;;  %s1665_s0 = sand.u32 1, %s2091_s17  }
0x18cb   : > { %s1666_s14 = scalar_lea.sflag [#allocation4], %s1665_s0 }
0x18cc   : > { %p1952_p0 = pnand %p1955_p13, %p2215_p6 }
0x18ce   : > { %p1953_p1 = pneg %p1952_p0 }
0x18d0   : > { %2086 = dma.done.wait (%p1953_p1), %s1666_s14, 16  }
0x18d1   : > { %2088 = vsyncadd (%p1953_p1), %s1666_s14, 4294967280  ;;  %p21_p2 = scmp.ge.s32.totalorder %s2198_s23, 4   ;;  %s2584_s17 = smov %s2095_s18 }
0x18d2   : > { %s2585_s18 = smov %s2099_s19  ;;  %s2586_s19 = smov %s2209_s26 }
0x18d3   : > { %s2587_s20 = smov %s2198_s23  ;;  %23 = sbr.rel (!%p21_p2) target bundleno = 5 (0x5), region = 99 }
0x18d8   :  { %1670 = vsyncpa [#allocation4], 1 }
0x18d9   :  { %1672 = vsyncpa [#allocation4 + $0x1], 1 }

</bundles_post_ra>
